<compile_context>
chip_gen: v7x
topology: tpu7x:2x2x1
jax: 0.10.0
libtpu: 0.0.40
codegen_flags: <defaults>
</compile_context>

<pallas_src>
import functools
import math

import jax
import jax.numpy as jnp
from jax.experimental import pallas as pl
from jax.experimental.pallas import tpu as pltpu


# ---------------------------------------------------------------------------
# Fused SE kernel: one grid step per batch element.
# ---------------------------------------------------------------------------
def _se_kernel(x_ref, w1_ref, b1_ref, w2_ref, b2_ref, o_ref, *, inv_hw):
    # x_ref : (1, C, HW)  one batch element; channels on sublanes, HW on lanes
    # w1_ref: (Cr, C)     fc1 weight (1x1 conv, squeezed)
    # b1_ref: (Cr, 1)     fc1 bias (column)
    # w2_ref: (C, Cr)     fc2 weight
    # b2_ref: (C, 1)      fc2 bias (column)
    # o_ref : (1, C, HW)
    x = x_ref[0]                                                # (C, HW)

    # AdaptiveAvgPool2d(1): cross-lane mean over HW  -> (C, 1)
    pooled = jnp.sum(x, axis=1, keepdims=True) * inv_hw

    # fc1 (1x1 conv) + ReLU : (Cr, C) @ (C, 1) -> (Cr, 1)
    h = jnp.dot(w1_ref[...], pooled, preferred_element_type=jnp.float32)
    h = jnp.maximum(h + b1_ref[...], 0.0)

    # fc2 (1x1 conv) + sigmoid : (C, Cr) @ (Cr, 1) -> (C, 1)
    g = jnp.dot(w2_ref[...], h, preferred_element_type=jnp.float32)
    g = 1.0 / (1.0 + jnp.exp(-(g + b2_ref[...])))

    # channel-wise rescale: (C, 1) gate lane-broadcast over HW
    o_ref[0] = (x * g).astype(o_ref.dtype)


# ---------------------------------------------------------------------------
# Wrapper (NCHW in / NCHW out, like the PyTorch module)
# ---------------------------------------------------------------------------
def se_forward(x_nchw, fc1_w, fc1_b, fc2_w, fc2_b):
    N, C, H, W = x_nchw.shape
    HW = H * W
    Cr = fc1_w.shape[0]
    assert fc1_w.shape == (Cr, C, 1, 1) and fc2_w.shape == (C, Cr, 1, 1)

    # flatten spatial dims (pure reshape of native NCHW, no transpose)
    x = x_nchw.reshape(N, C, HW)
    w1 = fc1_w.reshape(Cr, C)
    w2 = fc2_w.reshape(C, Cr)
    b1 = fc1_b.reshape(Cr, 1)
    b2 = fc2_b.reshape(C, 1)

    kernel = functools.partial(_se_kernel, inv_hw=1.0 / float(HW))
    # TODO(synk): for very large H*W, add a spatial grid axis with a two-pass
    # (reduce-then-scale) structure instead of one full-sample block.
    out = pl.pallas_call(
        kernel,
        out_shape=jax.ShapeDtypeStruct((N, C, HW), x.dtype),
        grid_spec=pltpu.PrefetchScalarGridSpec(
            num_scalar_prefetch=0,
            grid=(N,),
            in_specs=[
                pl.BlockSpec((1, C, HW), lambda n: (n, 0, 0)),
                pl.BlockSpec((Cr, C), lambda n: (0, 0)),
                pl.BlockSpec((Cr, 1), lambda n: (0, 0)),
                pl.BlockSpec((C, Cr), lambda n: (0, 0)),
                pl.BlockSpec((C, 1), lambda n: (0, 0)),
            ],
            out_specs=pl.BlockSpec((1, C, HW), lambda n: (n, 0, 0)),
        ),
        compiler_params=pltpu.CompilerParams(
            dimension_semantics=("parallel",)),
    )(x, w1, b1, w2, b2)

    return out.reshape(N, C, H, W)


# ---------------------------------------------------------------------------
# Pure-JAX reference (for a tight sanity check against the Pallas path)
# ---------------------------------------------------------------------------
def _reference(x, fc1_w, fc1_b, fc2_w, fc2_b):
    N, C, H, W = x.shape
    Cr = fc1_w.shape[0]
    pooled = jnp.mean(x, axis=(2, 3))                            # (N, C)
    h = pooled @ fc1_w.reshape(Cr, C).T + fc1_b[None, :]         # (N, Cr)
    h = jnp.maximum(h, 0.0)
    g = h @ fc2_w.reshape(C, Cr).T + fc2_b[None, :]              # (N, C)
    g = 1.0 / (1.0 + jnp.exp(-g))
    return x * g[:, :, None, None]


if __name__ == "__main__":
    key = jax.random.PRNGKey(0)
    kx, kw1, kb1, kw2, kb2 = jax.random.split(key, 5)

    N, C, H, W = 2, 8, 16, 16
    reduction = 2
    Cr = C // reduction

    x = jax.random.normal(kx, (N, C, H, W), jnp.float32)

    # deterministic params mirroring the module's __init__:
    # Conv2d weight ~ N(0, sqrt(2/n)), n = kh*kw*out_channels (kh=kw=1)
    fc1_w = jax.random.normal(kw1, (Cr, C, 1, 1), jnp.float32) * math.sqrt(2.0 / Cr)
    fc2_w = jax.random.normal(kw2, (C, Cr, 1, 1), jnp.float32) * math.sqrt(2.0 / C)
    fc1_b = jax.random.normal(kb1, (Cr,), jnp.float32) * 0.05
    fc2_b = jax.random.normal(kb2, (C,), jnp.float32) * 0.05

    out = se_forward(x, fc1_w, fc1_b, fc2_w, fc2_b)
    out = jax.block_until_ready(out)
    assert out.shape == (N, C, H, W)

    ref = _reference(x, fc1_w, fc1_b, fc2_w, fc2_b)
    if not bool(jnp.allclose(out, ref, atol=1e-5, rtol=1e-5)):
        err = float(jnp.max(jnp.abs(out - ref)))
        raise AssertionError(f"Pallas result does not match reference (max err {err})")

    print("KERNEL_OK")
</pallas_src>

<mosaic_0001>
module attributes {stable_mosaic.version = 11 : i64} {
  func.func @_se_kernel(%arg0: i32, %arg1: memref<1x8x256xf32, #tpu.memory_space<vmem>>, %arg2: memref<4x8xf32, #tpu.memory_space<vmem>>, %arg3: memref<4x1xf32, #tpu.memory_space<vmem>>, %arg4: memref<8x4xf32, #tpu.memory_space<vmem>>, %arg5: memref<8x1xf32, #tpu.memory_space<vmem>>, %arg6: memref<1x8x256xf32, #tpu.memory_space<vmem>>) attributes {dimension_semantics = [#tpu.dimension_semantics<parallel>], iteration_bounds = array<i64: 2>, scalar_prefetch = 0 : i64, scratch_operands = 0 : i64, tpu.core_type = #tpu.core_type<tc>, window_params = [{transform_indices = @transform_0, window_bounds = array<i64: 1, 8, 256>}, {pipeline_mode = #tpu.pipeline_mode<synchronous>, transform_indices = @transform_1, window_bounds = array<i64: 4, 8>}, {pipeline_mode = #tpu.pipeline_mode<synchronous>, transform_indices = @transform_2, window_bounds = array<i64: 4, 1>}, {pipeline_mode = #tpu.pipeline_mode<synchronous>, transform_indices = @transform_3, window_bounds = array<i64: 8, 4>}, {pipeline_mode = #tpu.pipeline_mode<synchronous>, transform_indices = @transform_4, window_bounds = array<i64: 8, 1>}, {transform_indices = @transform_5, window_bounds = array<i64: 1, 8, 256>}]} {
    %c0 = arith.constant 0 : index
    %c0_0 = arith.constant 0 : index
    %c0_1 = arith.constant 0 : index
    %0 = vector.load %arg1[%c0, %c0_0, %c0_1] : memref<1x8x256xf32, #tpu.memory_space<vmem>>, vector<1x8x256xf32>
    %1 = vector.shape_cast %0 : vector<1x8x256xf32> to vector<8x256xf32>
    %cst = arith.constant dense<0.000000e+00> : vector<8xf32>
    %2 = vector.multi_reduction <add>, %1, %cst [1] : vector<8x256xf32> to vector<8xf32>
    %3 = vector.shape_cast %2 : vector<8xf32> to vector<8x1xf32>
    %cst_2 = arith.constant 3.906250e-03 : f32
    %4 = vector.broadcast %cst_2 : f32 to vector<8x1xf32>
    %5 = arith.mulf %3, %4 : vector<8x1xf32>
    %c0_3 = arith.constant 0 : index
    %c0_4 = arith.constant 0 : index
    %6 = vector.load %arg2[%c0_3, %c0_4] : memref<4x8xf32, #tpu.memory_space<vmem>>, vector<4x8xf32>
    %cst_5 = arith.constant dense<0.000000e+00> : vector<4x1xf32>
    %7 = tpu.matmul %6, %5, %cst_5 {dimension_numbers = #tpu.dot_dimension_numbers<[1], [0], [0], [1], [0, 0, 1, 1], [], []>} : vector<4x8xf32>, vector<8x1xf32>, vector<4x1xf32> -> vector<4x1xf32>
    %c0_6 = arith.constant 0 : index
    %c0_7 = arith.constant 0 : index
    %8 = vector.load %arg3[%c0_6, %c0_7] : memref<4x1xf32, #tpu.memory_space<vmem>>, vector<4x1xf32>
    %9 = arith.addf %7, %8 : vector<4x1xf32>
    %cst_8 = arith.constant 0.000000e+00 : f32
    %10 = vector.broadcast %cst_8 : f32 to vector<4x1xf32>
    %11 = arith.maximumf %9, %10 : vector<4x1xf32>
    %c0_9 = arith.constant 0 : index
    %c0_10 = arith.constant 0 : index
    %12 = vector.load %arg4[%c0_9, %c0_10] : memref<8x4xf32, #tpu.memory_space<vmem>>, vector<8x4xf32>
    %cst_11 = arith.constant dense<0.000000e+00> : vector<8x1xf32>
    %13 = tpu.matmul %12, %11, %cst_11 {dimension_numbers = #tpu.dot_dimension_numbers<[1], [0], [0], [1], [0, 0, 1, 1], [], []>} : vector<8x4xf32>, vector<4x1xf32>, vector<8x1xf32> -> vector<8x1xf32>
    %c0_12 = arith.constant 0 : index
    %c0_13 = arith.constant 0 : index
    %14 = vector.load %arg5[%c0_12, %c0_13] : memref<8x1xf32, #tpu.memory_space<vmem>>, vector<8x1xf32>
    %15 = arith.addf %13, %14 : vector<8x1xf32>
    %cst_14 = arith.constant 0.000000e+00 : f32
    %16 = vector.broadcast %cst_14 : f32 to vector<8x1xf32>
    %17 = arith.subf %16, %15 : vector<8x1xf32>
    %18 = math.exp %17 : vector<8x1xf32>
    %cst_15 = arith.constant 1.000000e+00 : f32
    %19 = vector.broadcast %cst_15 : f32 to vector<8x1xf32>
    %20 = arith.addf %19, %18 : vector<8x1xf32>
    %cst_16 = arith.constant 1.000000e+00 : f32
    %21 = vector.broadcast %cst_16 : f32 to vector<8x1xf32>
    %22 = arith.divf %21, %20 : vector<8x1xf32>
    %23 = vector.broadcast %22 : vector<8x1xf32> to vector<8x256xf32>
    %24 = arith.mulf %1, %23 : vector<8x256xf32>
    %c0_17 = arith.constant 0 : index
    %c0_18 = arith.constant 0 : index
    %c0_19 = arith.constant 0 : index
    %25 = vector.load %arg6[%c0_17, %c0_18, %c0_19] : memref<1x8x256xf32, #tpu.memory_space<vmem>>, vector<1x8x256xf32>
    %26 = vector.shape_cast %25 : vector<1x8x256xf32> to vector<8x256xf32>
    %27 = vector.shape_cast %24 : vector<8x256xf32> to vector<1x8x256xf32>
    tpu.vector_store %arg6[%c0_17, %c0_18, %c0_19], %27 {strides = array<i32>} : memref<1x8x256xf32, #tpu.memory_space<vmem>>, vector<1x8x256xf32>,
    return
  }
  func.func @transform_0(%arg0: i32) -> (i32, i32, i32) {
    %c0_i32 = arith.constant 0 : i32
    %c0_i32_0 = arith.constant 0 : i32
    %c0_i32_1 = arith.constant 0 : i32
    return %arg0, %c0_i32, %c0_i32_0 : i32, i32, i32
  }
  func.func @transform_1(%arg0: i32) -> (i32, i32) {
    %c0_i32 = arith.constant 0 : i32
    %c0_i32_0 = arith.constant 0 : i32
    %c0_i32_1 = arith.constant 0 : i32
    return %c0_i32, %c0_i32_0 : i32, i32
  }
  func.func @transform_2(%arg0: i32) -> (i32, i32) {
    %c0_i32 = arith.constant 0 : i32
    %c0_i32_0 = arith.constant 0 : i32
    %c0_i32_1 = arith.constant 0 : i32
    return %c0_i32, %c0_i32_0 : i32, i32
  }
  func.func @transform_3(%arg0: i32) -> (i32, i32) {
    %c0_i32 = arith.constant 0 : i32
    %c0_i32_0 = arith.constant 0 : i32
    %c0_i32_1 = arith.constant 0 : i32
    return %c0_i32, %c0_i32_0 : i32, i32
  }
  func.func @transform_4(%arg0: i32) -> (i32, i32) {
    %c0_i32 = arith.constant 0 : i32
    %c0_i32_0 = arith.constant 0 : i32
    %c0_i32_1 = arith.constant 0 : i32
    return %c0_i32, %c0_i32_0 : i32, i32
  }
  func.func @transform_5(%arg0: i32) -> (i32, i32, i32) {
    %c0_i32 = arith.constant 0 : i32
    %c0_i32_0 = arith.constant 0 : i32
    %c0_i32_1 = arith.constant 0 : i32
    return %arg0, %c0_i32, %c0_i32_0 : i32, i32, i32
  }
}

</mosaic_0001>

<bundles_post_ra>
// kernel: tpu_custom_call.1
= control target key start
LH: loop header
LB: loop body
LE: loop exit
PB: predicated region body
PF: predicated region fallthrough
CT: control target
= control target key end

     0   :  { %10 = vsyncpa [#allocation3], 0  ;;  %s901_s0 = inlined_call_operand.hbm [shape: f32[2,8,256], index: 0, kind: input, shape index: {}]   ;;  %s902_s1 = inlined_call_operand.vmem [shape: f32[4,8], index: 1, kind: input, shape index: {}]   ;;  %s903_s2 = inlined_call_operand.vmem [shape: f32[4,1], index: 2, kind: input, shape index: {}]   ;;  %s904_s3 = inlined_call_operand.vmem [shape: f32[8,4], index: 3, kind: input, shape index: {}]   ;;  %s905_s4 = inlined_call_operand.vmem [shape: f32[8,1], index: 4, kind: input, shape index: {}]   ;;  %s906_s5 = inlined_call_operand.hbm [shape: f32[2,8,256], index: 5, kind: output, shape index: {}]  }
   0x1   :  { %12 = vsyncpa [#allocation3 + $0x1], 0 }
   0x2   :  { %13 = vsyncpa [#allocation4], 0 }
   0x3   :  { %15 = vsyncpa [#allocation4 + $0x1], 0  ;;  %s724_s18 = smov 0   ;;  %s726_s19 = smov 0  }
   0x4   :  { %s728_s20 = smov 0   ;;  %s730_s21 = smov 0  }
   0x5 LB: > { %s745_s22 = sadd.s32 4294967295, %s687_s21   ;;  %s504_s23 = sadd.s32 4294967294, %s687_s21   ;;  %s687_s21 = sphi %s730_s21, %s921_s21   ;;  %s683_s20 = sphi %s728_s20, %s920_s20   ;;  %s679_s19 = sphi %s726_s19, %s919_s19   ;;  %s675_s18 = sphi %s724_s18, %s918_s18  }
   0x6   : > { %s749_s24 = sadd.s32 1, %s687_s21   ;;  %s28_s25 = sadd.s32 1, %s683_s20 }
   0x7   : > { %s25_s26 = ssub.s32 %s687_s21, %s749_s24  ;;  %p35_p0 = scmp.ne.s32.totalorder %s683_s20, %s679_s19 }
   0x8   : > { %p26_p1 = scmp.eq.s32.totalorder %s25_s26, 0  ;;  %p36_p2 = scmp.eq.s32.totalorder %s687_s21, 0 }
   0x9   : > { %p41_p3 = scmp.ne.s32.totalorder %s679_s19, %s675_s18  ;;  %p42_p4 = scmp.eq.s32.totalorder %s745_s22, 0 }
   0xa   : > { %s761_s27 = scalar_select %p26_p1, %s683_s20, %s28_s25  }
   0xb   : > { %p763_p5 = por %p36_p2, %p35_p0  ;;  %p767_p6 = por %p42_p4, %p41_p3 }
   0xc   : > { %p149_p7 = scmp.eq.s32.totalorder %s745_s22, 1  ;;  %p155_p8 = scmp.eq.s32.totalorder %s504_s23, 1 }
   0xd   : > { %p549_p10 = scmp.lt.s32.totalorder %s687_s21, 2  ;;  %s187_s7 = sand.u32 1, %s683_s20  }
   0xe   : > { %p774_p11 = por %p149_p7, %p35_p0  ;;  %p778_p12 = por %p155_p8, %p41_p3 }
   0xf   : > { %s521_s8 = sshll.u32 %s687_s21, 8  ;;  %s507_s9 = sshll.u32 %s187_s7, 4 }
  0x10   : > { %s910_s30 = scalar_select %p774_p11, 1, 0 }
  0x11   : > { %s911_s6 = scalar_select %p778_p12, 1, 0 }
  0x12   : > { %s787_s12 = scalar_lea.hbm %s901_s0, %s521_s8  ;;  %s191_s13 = scalar_lea.vmem [#allocation2], %s507_s9 }
  0x13   : > { %s199_s14 = sshll.u32 %s191_s13, 4  ;;  %p791_p13 = pnand %p549_p10, %p763_p5  ;;  %s795_s14 = int_to_ptr.vmem [resolvable:$true] %s199_s14 }
  0x14   : > { %s188_s16 = scalar_lea.sflag [#allocation3], %s187_s7  ;;  %s591_s17 = scalar_lea.hbm %s787_s12, 256 }
  0x15   : > { %p592_p2 = scmp.ne.s32.totalorder %s787_s12, %s591_s17  ;;  %p593_p3 = pneg %p791_p13 }
  0x16   : > { %s596_s26 = scalar_lea.hbm %s901_s0, 512  ;;  %p597_p5 = scmp.lt.u32.totalorder %s787_s12, %s901_s0 }
  0x17   : > { %p594_p4 = pnand %p593_p3, %p592_p2  ;;  %p598_p8 = scmp.lt.u32.totalorder %s596_s26, %s591_s17 }
  0x18   : > { %p600_p9 = scmp.lt.u32.totalorder %s591_s17, %s787_s12 }
  0x19   : > { %p595_p7 = pneg %p594_p4  ;;  %p599_p10 = por %p598_p8, %p597_p5 }
  0x1b   : > { %p601_p0 = por %p600_p9, %p599_p10 }
  0x1d   : > { %p602_p1 = pnand %p601_p0, %p595_p7 }
  0x1f   : > { %605 = shalt.err (!%p602_p1)
}
  0x20   : > { %s606_s7 = scalar_lea.vmem %s795_s14, 256  ;;  %s689_s9 = smov [#allocation2]  }
  0x21   : > { %p607_p2 = scmp.ne.s32.totalorder %s795_s14, %s606_s7  ;;  %s611_s10 = sshll.u32 %s689_s9, 4  ;;  %s612_s10 = int_to_ptr.vmem [resolvable:$false] %s611_s10 }
  0x22   : > { %s613_s11 = scalar_lea.vmem %s612_s10, 512  ;;  %p614_p11 = scmp.lt.s32.totalorder %s795_s14, %s612_s10 }
  0x23   : > { %p609_p4 = pnand %p607_p2, %p593_p3  ;;  %p615_p5 = scmp.lt.s32.totalorder %s613_s11, %s606_s7 }
  0x25   : > { %p610_p12 = pneg %p609_p4  ;;  %p616_p8 = por %p615_p5, %p614_p11 }
  0x27   : > { %p617_p9 = pnand %p616_p8, %p610_p12 }
  0x29   : > { %620 = shalt.err (!%p617_p9)
}
  0x2a   : > { %544 = dma.hbm_to_vmem [thread:$0]  (!%p791_p13), %s787_s12, 256, %s795_s14, %s188_s16  }
  0x2b   : > { %p913_p0 = scmp.lt.s32.totalorder %s687_s21, 3  ;;  %p914_p1 = scmp.ge.s32.totalorder %s687_s21, 1 }
  0x2d   : > { %p205_p3 = pnand %p914_p1, %p913_p0 }
  0x2e   : > { %s829_s13 = sand.u32 (!%p205_p3), 1, %s679_s19  }
  0x2f   : > { %208 = sbr.rel (%p205_p3) target bundleno = 806 (0x326), region = 40  ;;  %s511_s17 = sshll.u32 (!%p205_p3), %s829_s13, 4 }
  0x30   : > { %s211_s23 = scalar_lea.sflag (!%p205_p3), [#allocation3], %s829_s13  ;;  %s214_s15 = scalar_lea.vmem (!%p205_p3), [#allocation2], %s511_s17 }
  0x36   : > { %666 = dma.done.wait (%p767_p6), %s211_s23, 256  }
  0x37   : > { %668 = vsyncadd (%p767_p6), %s211_s23, 4294967040  ;;  %v241_v0 = vld [vmem:[%s214_s15] sm:$0xff]  ;;  %v242_v1 = vld [vmem:[%s214_s15 + $0x8] sm:$0xff]  ;;  %v690_v3 = vmov 0.0   ;;  %vm691_vm0 = vmmov 0   ;;  %vm249_vm1 = vcmask 64512  }
  0x38   : > { %v243_v2 = vadd.f32 %v242_v1, %v241_v0  ;;  %527 = vmatprep.subr.mxu0 %v690_v3  ;;  %532 = vmatprep.subr.mxu1 %v690_v3  ;;  %v247_v6 = vld [vmem:[%s902_s1] sm:$0xf]  ;;  %vm330_vm2 = vcmask 1043456   ;;  %vm326_vm3 = vcmask 31744   ;;  %v692_v13 = vmov 0   ;;  %s522_s7 = sshll.u32 %s745_s22, 8 }
  0x39   : > { %529 = vmatprep.mubr.msk.f32.mxu0 %vm691_vm0, %v690_v3  ;;  %534 = vmatprep.mubr.msk.f32.mxu1 %vm691_vm0, %v690_v3  ;;  %v248_v7 = vld [vmem:[%s903_s2] sm:$0xf]  ;;  %s240_s9 = scalar_lea.vmem [#allocation5], %s511_s17  ;;  %s857_s15 = scalar_lea.hbm %s906_s5, %s522_s7 }
  0x3a   : > { %244 = vadd.xlane.f32.xlu0 %v243_v2  ;;  %v324_v12 = vld [vmem:[%s904_s3] sm:$0xff]  ;;  %s434_s10 = sshll.u32 %s240_s9, 4  ;;  %s420_s12 = scalar_lea.sflag [#allocation4], %s829_s13  ;;  %s859_s10 = int_to_ptr.vmem [resolvable:$true] %s434_s10 }
  0x3b   : > { %586 = vset.pattern.permute.xlu0 %v692_v13  ;;  %v325_v14 = vld [vmem:[%s905_s4] sm:$0xff]  ;;  %s621_s22 = scalar_lea.vmem %s859_s10, 256  ;;  %p915_p11 = scmp.ne.s32.totalorder %s910_s30, 0 }
  0x3c   : > { %p622_p6 = scmp.ne.s32.totalorder %s859_s10, %s621_s22  ;;  %s693_s17 = smov [#allocation5]  }
  0x3d   : > { %s625_s14 = sshll.u32 %s693_s17, 4  ;;  %s626_s14 = int_to_ptr.vmem [resolvable:$false] %s625_s14 }
  0x3e   : > { %p623_p12 = pnand %p622_p6, %p915_p11  ;;  %s627_s29 = scalar_lea.vmem %s626_s14, 512 }
  0x3f   : > { %p628_p7 = scmp.lt.s32.totalorder %s859_s10, %s626_s14  ;;  %p629_p10 = scmp.lt.s32.totalorder %s627_s29, %s621_s22 }
  0x40   : > { %p624_p13 = pneg %p623_p12 }
  0x41   : > { %p630_p2 = por %p629_p10, %p628_p7 }
  0x43   : > { %p631_p4 = pnand %p630_p2, %p624_p13 }
  0xc7   : > { %v245_v4 = vpop.xlane.xlu0 %244 }
  0xc8   : > { %v246_v5 = vmul.f32 0.00390625, %v245_v4 }
  0xca   : > { %528 = vmatpush3.msra.mxu0 %v246_v5 }
  0xcb   : > { %530 = vmatmul.mubr.msk.f32.vlgmr.msra.gmra.mrb[0].mxu0 %vm249_vm1, %v247_v6 }
 0x19e   : > { %v319_v8 = vpop.f32.mrb[0].mxu0 }
 0x19f   : > { %v320_v9 = vadd.f32 %v319_v8, %v248_v7  ;;  %v531_v10 = vpop.f32.mrb[1].mxu0 }
 0x1a1   : > { %v323_v11 = vmax.f32 %v320_v9, 0.0 }
 0x1a3   : > { %533 = vmatpush3.msk.msra.mxu1 %vm330_vm2, %v323_v11 }
 0x1a4   : > { %535 = vmatmul.mubr.msk.f32.vlgmr.msra.gmra.mrb[0].mxu1 %vm326_vm3, %v324_v12 }
 0x277   : > { %v400_v15 = vpop.f32.mrb[0].mxu1 }
 0x278   : > { %v401_v16 = vadd.f32 %v400_v15, %v325_v14  ;;  %v536_v17 = vpop.f32.mrb[1].mxu1 }
 0x27a   : > { %v404_v18 = vsub.f32 0.0, %v401_v16 }
 0x27c   : > { %v405_v19 = vmul.f32 1.442695, %v404_v18 }
 0x27e   : > { %587 = vpow2.f32 %v405_v19 }
 0x288   : > { %v588_v20 = vpop.eup %587 }
 0x289   : > { %v407_v21 = vadd.f32 1.0, %v588_v20 }
 0x28b   : > { %589 = vrcp.f32 %v407_v21 }
 0x295   : > { %v590_v22 = vpop.eup %589 }
 0x296   : > { %412 = vperm.xlu0 %586, %v590_v22  }
 0x315   : > { %v413_v23 = vpop.permute.xlu0 %412 }
 0x316   : > { %v415_v24 = vmul.f32 %v413_v23, %v241_v0  ;;  %v416_v25 = vmul.f32 %v413_v23, %v242_v1 }
 0x318   : > { %417 = vst [vmem:[%s240_s9] sm:$0xff] %v415_v24  ;;  %418 = vst [vmem:[%s240_s9 + $0x8] sm:$0xff] %v416_v25 }
 0x319   : > { %634 = shalt.err (!%p631_p4)
}
 0x31a   : > { %s635_s13 = scalar_lea.hbm %s857_s15, 256  ;;  %s639_s26 = scalar_lea.hbm %s906_s5, 512 }
 0x31b   : > { %p636_p5 = scmp.ne.s32.totalorder %s857_s15, %s635_s13  ;;  %p640_p0 = scmp.lt.u32.totalorder %s857_s15, %s906_s5 }
 0x31c   : > { %p641_p1 = scmp.lt.u32.totalorder %s639_s26, %s635_s13  ;;  %p643_p6 = scmp.lt.u32.totalorder %s635_s13, %s857_s15 }
 0x31d   : > { %p637_p8 = pnand %p636_p5, %p915_p11 }
 0x31e   : > { %p642_p3 = por %p641_p1, %p640_p0 }
 0x31f   : > { %p638_p9 = pneg %p637_p8 }
 0x320   : > { %p644_p12 = por %p643_p6, %p642_p3 }
 0x322   : > { %p645_p13 = pnand %p644_p12, %p638_p9 }
 0x324   : > { %648 = shalt.err (!%p645_p13)
}
 0x325   : > { %539 = dma.vmem_to_hbm [thread:$0]  (%p915_p11), %s859_s10, 256, %s857_s15, %s420_s12  }
 0x326 PF: > { %s446_s7 = sand.u32 1, %s675_s18   ;;  %p916_p7 = scmp.ne.s32.totalorder %s911_s6, 0 }
 0x327   : > { %p917_p10 = scmp.ge.s32.totalorder %s687_s21, 2  ;;  %s447_s9 = scalar_lea.sflag [#allocation4], %s446_s7 }
 0x329   : > { %p546_p2 = pnand %p917_p10, %p916_p7 }
 0x32b   : > { %670 = dma.done.wait (!%p546_p2), %s447_s9, 256  }
 0x32c   : > { %672 = vsyncadd (!%p546_p2), %s447_s9, 4294967040  ;;  %p18_p4 = scmp.ge.s32.totalorder %s749_s24, 4   ;;  %s918_s18 = smov %s679_s19 }
 0x32d   : > { %s919_s19 = smov %s683_s20  ;;  %s920_s20 = smov %s761_s27 }
 0x32e   : > { %s921_s21 = smov %s749_s24  ;;  %20 = sbr.rel (!%p18_p4) target bundleno = 5 (0x5), region = 85 }
 0x335   :  { %452 = vsyncpa [#allocation3], 1 }
 0x336   :  { %454 = vsyncpa [#allocation3 + $0x1], 1 }
 0x337   :  { %455 = vsyncpa [#allocation4], 1 }
 0x338   :  { %457 = vsyncpa [#allocation4 + $0x1], 1 }

</bundles_post_ra>
